<compile_context>
chip_gen: v6e
topology: v6e:2x2x1
jax: 0.10.0
libtpu: 0.0.40
codegen_flags: <defaults>
</compile_context>

<pallas_src>
import functools
import math

import jax
import jax.numpy as jnp
from jax.experimental import pallas as pl
from jax.experimental.pallas import tpu as pltpu


def _round_up(x, m):
    return (x + m - 1) // m * m


def _cdiv(a, b):
    return -(-a // b)


def _sublane_multiple(dtype):
    bits = jnp.dtype(dtype).itemsize * 8
    return max(8, 256 // bits)  # 8 for f32, 16 for bf16, 32 for int8


def _pick_tile(total, cap, multiple):
    """Largest t <= cap that divides `total` and is a multiple of `multiple`.

    Returns `total` itself when total <= cap (full-dim blocks are always legal).
    Returns None if no such divisor exists (caller should pad `total`).
    Never returns anything larger than max(cap, total<=cap ? total : 0).
    """
    cap = max(multiple, (cap // multiple) * multiple)
    if total <= cap:
        return total
    t = cap
    while t >= multiple:
        if total % t == 0:
            return t
        t -= multiple
    return None


def _hw_config():
    """Per-generation tile caps and scoped-VMEM limit."""
    vmem_cap = 128 << 20
    try:
        info = pltpu.get_tpu_info()
        vmem_cap = int(getattr(info, "vmem_capacity_bytes", vmem_cap))
    except Exception:
        pass
    if vmem_cap <= (64 << 20):
        # v7x-class: 64 MiB VMEM per TensorCore, 3.2 TB/s HBM -> smaller N tile,
        # deep K, conservative scoped limit.
        return dict(tm=512, tn=256, tk=1024, vmem_limit=48 << 20)
    # v5e / v6e: 128 MiB physical VMEM; raise the scoped limit well past the
    # 16/32 MiB defaults and use big M/K tiles to cut weight re-streaming and
    # accumulator RMW frequency.
    return dict(tm=512, tn=512, tk=1024, vmem_limit=96 << 20)


def _fit_caps(tm, tn, tk, pool, in_isz, out_isz, budget):
    """Shrink tile caps until the double-buffered working set fits `budget`."""
    def usage(tm_, tn_, tk_):
        return (2 * tm_ * tk_ * in_isz            # x (double-buffered)
                + 2 * pool * tk_ * tn_ * in_isz   # weight (double-buffered)
                + 2 * pool * tn_ * 4              # bias (f32, tiny)
                + 2 * tm_ * tn_ * out_isz         # output (double-buffered)
                + pool * tm_ * tn_ * 4)           # f32 accumulator scratch

    while usage(tm, tn, tk) > budget:
        if tk > 512:
            tk //= 2
        elif tm > 128:
            tm //= 2
        elif tn > 128:
            tn //= 2
        elif tk > 128:
            tk //= 2
        else:
            break
    return tm, tn, tk


def prepare_maxout_params(weight, bias, hidden_size, pool_size, compute_dtype=None):
    """One-time weight/bias re-layout (hoisted out of the forward path).

    weight: (hidden_size * pool_size, input_size)  -- nn.Linear layout,
            row index = h * pool_size + p
    bias:   (hidden_size * pool_size,)
    compute_dtype: optionally cast the weight (e.g. jnp.bfloat16) to halve
            weight HBM traffic and run the MXU at native bf16 rate; bias and
            accumulation stay float32.
    Returns wk: (pool, Kp, Hp), bk_f32: (pool, Hp); K padded to the sublane
    multiple, H padded to a multiple of 128 (lane-dense output stores).
    """
    input_size = weight.shape[1]
    w = weight.astype(compute_dtype) if compute_dtype is not None else weight
    sub = _sublane_multiple(w.dtype)
    Kp = _round_up(input_size, sub)
    Hp = _round_up(hidden_size, 128)

    w = w.reshape(hidden_size, pool_size, input_size)   # (H, P, K)
    w = jnp.transpose(w, (1, 2, 0))                     # (P, K, H)
    w = jnp.pad(w, ((0, 0), (0, Kp - input_size), (0, Hp - hidden_size)))

    b = bias.astype(jnp.float32).reshape(hidden_size, pool_size).T   # (P, H)
    b = jnp.pad(b, ((0, 0), (0, Hp - hidden_size)))
    return w, b


def _maxout_kernel(x_ref, w_ref, b_ref, o_ref, acc_ref, *, pool_size):
    # x_ref: (tm, tk), w_ref: (P, tk, tn), b_ref: (P, tn) f32,
    # o_ref: (tm, tn), acc_ref: (P, tm, tn) f32 scratch persisting over k.
    k = pl.program_id(2)
    nk = pl.num_programs(2)
    x = x_ref[...]

    for p in range(pool_size):   # static unroll over the (small) pool dim
        d = jnp.dot(x, w_ref[p], preferred_element_type=jnp.float32)

        @pl.when(k == 0)
        def _init(d=d, p=p):
            # Fold the bias into the first K step: no separate zero-fill of the
            # accumulator and no bias adds in the epilogue.
            acc_ref[p] = d + b_ref[p:p + 1]

        @pl.when(k > 0)
        def _accum(d=d, p=p):
            acc_ref[p] += d

    @pl.when(k == nk - 1)
    def _finalize():
        m = acc_ref[0]
        for p in range(1, pool_size):
            m = jnp.maximum(m, acc_ref[p])
        o_ref[...] = m.astype(o_ref.dtype)


def maxout_pallas(x, wk, bk, hidden_size, pool_size, *, tm=None, tn=None, tk=None):
    """Maxout forward: (..., input_size) -> (..., hidden_size).

    wk, bk must come from prepare_maxout_params (pre-permuted / pre-padded).
    """
    pool, Kp, Hp = wk.shape
    assert pool == pool_size and bk.shape == (pool_size, Hp)

    input_size = x.shape[-1]
    lead_shape = x.shape[:-1]
    M = math.prod(lead_shape) if lead_shape else 1

    cdtype = wk.dtype                     # matmul input dtype (f32 or bf16)
    out_dtype = x.dtype
    in_isz = jnp.dtype(cdtype).itemsize
    out_isz = jnp.dtype(out_dtype).itemsize
    sub = max(_sublane_multiple(cdtype), _sublane_multiple(out_dtype))

    cfg = _hw_config()
    vmem_limit = cfg["vmem_limit"]
    tm_cap, tn_cap, tk_cap = _fit_caps(
        tm or cfg["tm"], tn or cfg["tn"], tk or cfg["tk"],
        pool_size, in_isz, out_isz, budget=int(0.75 * vmem_limit))

    # ---- Tile selection (never exceeds the caps; pads instead). ----
    tm_ = min(tm_cap, _round_up(M, sub))
    tn_ = _pick_tile(Hp, tn_cap, 128)          # always succeeds: Hp % 128 == 0

    if Kp <= tk_cap:
        tk_, Kp_run = Kp, Kp                   # single K block (full dim)
    else:
        t = _pick_tile(Kp, tk_cap, 128)
        if t is None or t < min(512, tk_cap):
            # Awkward K factorization: zero-pad K to a multiple of the capped
            # tile instead of collapsing the axis or using a tiny K tile.
            tk_ = min(512, tk_cap)
            Kp_run = _round_up(Kp, tk_)
        else:
            tk_, Kp_run = t, Kp

    # v7x has 2 TensorCores: make sure the parallel (i, j) grid has >= 2 blocks
    # whenever the problem allows it.
    if _cdiv(M, tm_) * (Hp // tn_) < 2:
        if Hp >= 256:
            tn_ = _pick_tile(Hp, max(128, Hp // 2), 128)
        elif M >= 2 * sub:
            tm_ = _round_up(_cdiv(M, 2), sub)

    Mp = _round_up(M, tm_)

    x2 = x.reshape(M, input_size).astype(cdtype)
    if Mp != M or Kp_run != input_size:
        x2 = jnp.pad(x2, ((0, Mp - M), (0, Kp_run - input_size)))
    w_run = wk
    if Kp_run != Kp:
        # Rare path (awkward K): zero-pad the reduction axis at call time.
        w_run = jnp.pad(wk, ((0, 0), (0, Kp_run - Kp), (0, 0)))

    grid = (Mp // tm_, Hp // tn_, Kp_run // tk_)

    cost = pl.CostEstimate(
        flops=2 * Mp * Kp_run * Hp * pool_size,
        transcendentals=0,
        bytes_accessed=(Mp * Kp_run * in_isz
                        + (Mp // tm_) * pool_size * Kp_run * Hp * in_isz
                        + pool_size * Hp * 4
                        + Mp * Hp * out_isz),
    )

    kernel = functools.partial(_maxout_kernel, pool_size=pool_size)

    out2 = pl.pallas_call(
        kernel,
        out_shape=jax.ShapeDtypeStruct((Mp, Hp), out_dtype),
        grid_spec=pltpu.PrefetchScalarGridSpec(
            num_scalar_prefetch=0,
            grid=grid,
            in_specs=[
                pl.BlockSpec((tm_, tk_), lambda i, j, k: (i, k)),
                pl.BlockSpec((pool_size, tk_, tn_), lambda i, j, k: (0, k, j)),
                pl.BlockSpec((pool_size, tn_), lambda i, j, k: (0, j)),
            ],
            out_specs=pl.BlockSpec((tm_, tn_), lambda i, j, k: (i, j)),
            scratch_shapes=[pltpu.VMEM((pool_size, tm_, tn_), jnp.float32)],
        ),
        compiler_params=pltpu.CompilerParams(
            dimension_semantics=("parallel", "parallel", "arbitrary"),
            vmem_limit_bytes=vmem_limit,
        ),
        cost_estimate=cost,
    )(x2, w_run, bk)

    out = out2[:M, :hidden_size]
    return out.reshape(*lead_shape, hidden_size)


def maxout_reference(x, weight, bias, hidden_size, pool_size):
    out = jnp.einsum("...k,jk->...j", x, weight) + bias
    out = out.reshape(*out.shape[:-1], hidden_size, pool_size)
    return out.max(axis=-1)


if __name__ == "__main__":
    # Small shapes consistent with the module's forward.
    batch, seq = 2, 8
    input_size, hidden_size, pool_size = 32, 32, 4

    key = jax.random.PRNGKey(0)
    kx, kw, kb = jax.random.split(key, 3)

    x = jax.random.normal(kx, (batch, seq, input_size), dtype=jnp.float32)
    # Deterministic Linear params (shapes match nn.Linear(input, hidden*pool)).
    bound = 1.0 / jnp.sqrt(jnp.float32(input_size))
    weight = jax.random.uniform(
        kw, (hidden_size * pool_size, input_size),
        minval=-bound, maxval=bound, dtype=jnp.float32)
    bias = jax.random.uniform(
        kb, (hidden_size * pool_size,),
        minval=-bound, maxval=bound, dtype=jnp.float32)

    # One-time parameter re-layout (hoisted out of the per-call path).
    # (Pass compute_dtype=jnp.bfloat16 here to enable the bf16 matmul path.)
    wk, bk = jax.block_until_ready(
        prepare_maxout_params(weight, bias, hidden_size, pool_size))

    fwd = jax.jit(functools.partial(
        maxout_pallas, hidden_size=hidden_size, pool_size=pool_size))
    out = jax.block_until_ready(fwd(x, wk, bk))

    ref = maxout_reference(x, weight, bias, hidden_size, pool_size)
    assert out.shape == (batch, seq, hidden_size)
    assert jnp.allclose(out, ref, atol=1e-5, rtol=1e-5), "mismatch vs reference"

    print("KERNEL_OK")
</pallas_src>

<mosaic_0001>
module attributes {stable_mosaic.version = 11 : i64} {
  func.func @_maxout_kernel(%arg0: i32, %arg1: i32, %arg2: i32, %arg3: memref<8x32xf32, #tpu.memory_space<vmem>>, %arg4: memref<4x32x128xf32, #tpu.memory_space<vmem>>, %arg5: memref<4x128xf32, #tpu.memory_space<vmem>>, %arg6: memref<8x128xf32, #tpu.memory_space<vmem>>, %arg7: memref<4x8x128xf32, #tpu.memory_space<vmem>>) attributes {dimension_semantics = [#tpu.dimension_semantics<parallel>, #tpu.dimension_semantics<parallel>, #tpu.dimension_semantics<arbitrary>], iteration_bounds = array<i64: 2, 1, 1>, scalar_prefetch = 0 : i64, scratch_operands = 1 : i64, tpu.core_type = #tpu.core_type<tc>, window_params = [{transform_indices = @transform_0, window_bounds = array<i64: 8, 32>}, {transform_indices = @transform_1, window_bounds = array<i64: 4, 32, 128>}, {transform_indices = @transform_2, window_bounds = array<i64: 4, 128>}, {transform_indices = @transform_3, window_bounds = array<i64: 8, 128>}]} {
    %c0 = arith.constant 0 : index
    %c0_0 = arith.constant 0 : index
    %0 = vector.load %arg3[%c0, %c0_0] : memref<8x32xf32, #tpu.memory_space<vmem>>, vector<8x32xf32>
    %c0_1 = arith.constant 0 : index
    %c0_2 = arith.constant 0 : index
    %c0_3 = arith.constant 0 : index
    %1 = vector.load %arg4[%c0_1, %c0_2, %c0_3] : memref<4x32x128xf32, #tpu.memory_space<vmem>>, vector<1x32x128xf32>
    %2 = vector.shape_cast %1 : vector<1x32x128xf32> to vector<32x128xf32>
    %cst = arith.constant dense<0.000000e+00> : vector<8x128xf32>
    %3 = tpu.matmul %0, %2, %cst {dimension_numbers = #tpu.dot_dimension_numbers<[1], [0], [0], [1], [0, 0, 1, 1], [], []>} : vector<8x32xf32>, vector<32x128xf32>, vector<8x128xf32> -> vector<8x128xf32>
    %c0_i32 = arith.constant 0 : i32
    %4 = arith.cmpi eq, %arg2, %c0_i32 : i32
    %5 = arith.extui %4 : i1 to i32
    %c0_i32_4 = arith.constant 0 : i32
    %6 = arith.cmpi ne, %5, %c0_i32_4 : i32
    scf.if %6 {
      %c0_30 = arith.constant 0 : index
      %c0_31 = arith.constant 0 : index
      %40 = vector.load %arg5[%c0_30, %c0_31] : memref<4x128xf32, #tpu.memory_space<vmem>>, vector<1x128xf32>
      %41 = vector.broadcast %40 : vector<1x128xf32> to vector<8x128xf32>
      %42 = arith.addf %3, %41 : vector<8x128xf32>
      %c0_32 = arith.constant 0 : index
      %c0_33 = arith.constant 0 : index
      %c0_34 = arith.constant 0 : index
      %43 = vector.load %arg7[%c0_32, %c0_33, %c0_34] : memref<4x8x128xf32, #tpu.memory_space<vmem>>, vector<1x8x128xf32>
      %44 = vector.shape_cast %43 : vector<1x8x128xf32> to vector<8x128xf32>
      %45 = vector.shape_cast %42 : vector<8x128xf32> to vector<1x8x128xf32>
      tpu.vector_store %arg7[%c0_32, %c0_33, %c0_34], %45 {strides = array<i32>} : memref<4x8x128xf32, #tpu.memory_space<vmem>>, vector<1x8x128xf32>,
    } else {
    }
    %c0_i32_5 = arith.constant 0 : i32
    %7 = arith.cmpi sgt, %arg2, %c0_i32_5 : i32
    %8 = arith.extui %7 : i1 to i32
    %c0_i32_6 = arith.constant 0 : i32
    %9 = arith.cmpi ne, %8, %c0_i32_6 : i32
    scf.if %9 {
      %c0_30 = arith.constant 0 : index
      %c0_31 = arith.constant 0 : index
      %c0_32 = arith.constant 0 : index
      %40 = vector.load %arg7[%c0_30, %c0_31, %c0_32] : memref<4x8x128xf32, #tpu.memory_space<vmem>>, vector<1x8x128xf32>
      %41 = vector.shape_cast %40 : vector<1x8x128xf32> to vector<8x128xf32>
      %42 = arith.addf %41, %3 : vector<8x128xf32>
      %c0_33 = arith.constant 0 : index
      %c0_34 = arith.constant 0 : index
      %c0_35 = arith.constant 0 : index
      %43 = vector.load %arg7[%c0_33, %c0_34, %c0_35] : memref<4x8x128xf32, #tpu.memory_space<vmem>>, vector<1x8x128xf32>
      %44 = vector.shape_cast %43 : vector<1x8x128xf32> to vector<8x128xf32>
      %45 = vector.shape_cast %42 : vector<8x128xf32> to vector<1x8x128xf32>
      tpu.vector_store %arg7[%c0_33, %c0_34, %c0_35], %45 {strides = array<i32>} : memref<4x8x128xf32, #tpu.memory_space<vmem>>, vector<1x8x128xf32>,
    } else {
    }
    %c1 = arith.constant 1 : index
    %c0_7 = arith.constant 0 : index
    %c0_8 = arith.constant 0 : index
    %10 = vector.load %arg4[%c1, %c0_7, %c0_8] : memref<4x32x128xf32, #tpu.memory_space<vmem>>, vector<1x32x128xf32>
    %11 = vector.shape_cast %10 : vector<1x32x128xf32> to vector<32x128xf32>
    %cst_9 = arith.constant dense<0.000000e+00> : vector<8x128xf32>
    %12 = tpu.matmul %0, %11, %cst_9 {dimension_numbers = #tpu.dot_dimension_numbers<[1], [0], [0], [1], [0, 0, 1, 1], [], []>} : vector<8x32xf32>, vector<32x128xf32>, vector<8x128xf32> -> vector<8x128xf32>
    %c0_i32_10 = arith.constant 0 : i32
    %13 = arith.cmpi eq, %arg2, %c0_i32_10 : i32
    %14 = arith.extui %13 : i1 to i32
    %c0_i32_11 = arith.constant 0 : i32
    %15 = arith.cmpi ne, %14, %c0_i32_11 : i32
    scf.if %15 {
      %c1_30 = arith.constant 1 : index
      %c0_31 = arith.constant 0 : index
      %40 = vector.load %arg5[%c1_30, %c0_31] : memref<4x128xf32, #tpu.memory_space<vmem>>, vector<1x128xf32>
      %41 = vector.broadcast %40 : vector<1x128xf32> to vector<8x128xf32>
      %42 = arith.addf %12, %41 : vector<8x128xf32>
      %c1_32 = arith.constant 1 : index
      %c0_33 = arith.constant 0 : index
      %c0_34 = arith.constant 0 : index
      %43 = vector.load %arg7[%c1_32, %c0_33, %c0_34] : memref<4x8x128xf32, #tpu.memory_space<vmem>>, vector<1x8x128xf32>
      %44 = vector.shape_cast %43 : vector<1x8x128xf32> to vector<8x128xf32>
      %45 = vector.shape_cast %42 : vector<8x128xf32> to vector<1x8x128xf32>
      tpu.vector_store %arg7[%c1_32, %c0_33, %c0_34], %45 {strides = array<i32>} : memref<4x8x128xf32, #tpu.memory_space<vmem>>, vector<1x8x128xf32>,
    } else {
    }
    %c0_i32_12 = arith.constant 0 : i32
    %16 = arith.cmpi sgt, %arg2, %c0_i32_12 : i32
    %17 = arith.extui %16 : i1 to i32
    %c0_i32_13 = arith.constant 0 : i32
    %18 = arith.cmpi ne, %17, %c0_i32_13 : i32
    scf.if %18 {
      %c1_30 = arith.constant 1 : index
      %c0_31 = arith.constant 0 : index
      %c0_32 = arith.constant 0 : index
      %40 = vector.load %arg7[%c1_30, %c0_31, %c0_32] : memref<4x8x128xf32, #tpu.memory_space<vmem>>, vector<1x8x128xf32>
      %41 = vector.shape_cast %40 : vector<1x8x128xf32> to vector<8x128xf32>
      %42 = arith.addf %41, %12 : vector<8x128xf32>
      %c1_33 = arith.constant 1 : index
      %c0_34 = arith.constant 0 : index
      %c0_35 = arith.constant 0 : index
      %43 = vector.load %arg7[%c1_33, %c0_34, %c0_35] : memref<4x8x128xf32, #tpu.memory_space<vmem>>, vector<1x8x128xf32>
      %44 = vector.shape_cast %43 : vector<1x8x128xf32> to vector<8x128xf32>
      %45 = vector.shape_cast %42 : vector<8x128xf32> to vector<1x8x128xf32>
      tpu.vector_store %arg7[%c1_33, %c0_34, %c0_35], %45 {strides = array<i32>} : memref<4x8x128xf32, #tpu.memory_space<vmem>>, vector<1x8x128xf32>,
    } else {
    }
    %c2 = arith.constant 2 : index
    %c0_14 = arith.constant 0 : index
    %c0_15 = arith.constant 0 : index
    %19 = vector.load %arg4[%c2, %c0_14, %c0_15] : memref<4x32x128xf32, #tpu.memory_space<vmem>>, vector<1x32x128xf32>
    %20 = vector.shape_cast %19 : vector<1x32x128xf32> to vector<32x128xf32>
    %cst_16 = arith.constant dense<0.000000e+00> : vector<8x128xf32>
    %21 = tpu.matmul %0, %20, %cst_16 {dimension_numbers = #tpu.dot_dimension_numbers<[1], [0], [0], [1], [0, 0, 1, 1], [], []>} : vector<8x32xf32>, vector<32x128xf32>, vector<8x128xf32> -> vector<8x128xf32>
    %c0_i32_17 = arith.constant 0 : i32
    %22 = arith.cmpi eq, %arg2, %c0_i32_17 : i32
    %23 = arith.extui %22 : i1 to i32
    %c0_i32_18 = arith.constant 0 : i32
    %24 = arith.cmpi ne, %23, %c0_i32_18 : i32
    scf.if %24 {
      %c2_30 = arith.constant 2 : index
      %c0_31 = arith.constant 0 : index
      %40 = vector.load %arg5[%c2_30, %c0_31] : memref<4x128xf32, #tpu.memory_space<vmem>>, vector<1x128xf32>
      %41 = vector.broadcast %40 : vector<1x128xf32> to vector<8x128xf32>
      %42 = arith.addf %21, %41 : vector<8x128xf32>
      %c2_32 = arith.constant 2 : index
      %c0_33 = arith.constant 0 : index
      %c0_34 = arith.constant 0 : index
      %43 = vector.load %arg7[%c2_32, %c0_33, %c0_34] : memref<4x8x128xf32, #tpu.memory_space<vmem>>, vector<1x8x128xf32>
      %44 = vector.shape_cast %43 : vector<1x8x128xf32> to vector<8x128xf32>
      %45 = vector.shape_cast %42 : vector<8x128xf32> to vector<1x8x128xf32>
      tpu.vector_store %arg7[%c2_32, %c0_33, %c0_34], %45 {strides = array<i32>} : memref<4x8x128xf32, #tpu.memory_space<vmem>>, vector<1x8x128xf32>,
    } else {
    }
    %c0_i32_19 = arith.constant 0 : i32
    %25 = arith.cmpi sgt, %arg2, %c0_i32_19 : i32
    %26 = arith.extui %25 : i1 to i32
    %c0_i32_20 = arith.constant 0 : i32
    %27 = arith.cmpi ne, %26, %c0_i32_20 : i32
    scf.if %27 {
      %c2_30 = arith.constant 2 : index
      %c0_31 = arith.constant 0 : index
      %c0_32 = arith.constant 0 : index
      %40 = vector.load %arg7[%c2_30, %c0_31, %c0_32] : memref<4x8x128xf32, #tpu.memory_space<vmem>>, vector<1x8x128xf32>
      %41 = vector.shape_cast %40 : vector<1x8x128xf32> to vector<8x128xf32>
      %42 = arith.addf %41, %21 : vector<8x128xf32>
      %c2_33 = arith.constant 2 : index
      %c0_34 = arith.constant 0 : index
      %c0_35 = arith.constant 0 : index
      %43 = vector.load %arg7[%c2_33, %c0_34, %c0_35] : memref<4x8x128xf32, #tpu.memory_space<vmem>>, vector<1x8x128xf32>
      %44 = vector.shape_cast %43 : vector<1x8x128xf32> to vector<8x128xf32>
      %45 = vector.shape_cast %42 : vector<8x128xf32> to vector<1x8x128xf32>
      tpu.vector_store %arg7[%c2_33, %c0_34, %c0_35], %45 {strides = array<i32>} : memref<4x8x128xf32, #tpu.memory_space<vmem>>, vector<1x8x128xf32>,
    } else {
    }
    %c3 = arith.constant 3 : index
    %c0_21 = arith.constant 0 : index
    %c0_22 = arith.constant 0 : index
    %28 = vector.load %arg4[%c3, %c0_21, %c0_22] : memref<4x32x128xf32, #tpu.memory_space<vmem>>, vector<1x32x128xf32>
    %29 = vector.shape_cast %28 : vector<1x32x128xf32> to vector<32x128xf32>
    %cst_23 = arith.constant dense<0.000000e+00> : vector<8x128xf32>
    %30 = tpu.matmul %0, %29, %cst_23 {dimension_numbers = #tpu.dot_dimension_numbers<[1], [0], [0], [1], [0, 0, 1, 1], [], []>} : vector<8x32xf32>, vector<32x128xf32>, vector<8x128xf32> -> vector<8x128xf32>
    %c0_i32_24 = arith.constant 0 : i32
    %31 = arith.cmpi eq, %arg2, %c0_i32_24 : i32
    %32 = arith.extui %31 : i1 to i32
    %c0_i32_25 = arith.constant 0 : i32
    %33 = arith.cmpi ne, %32, %c0_i32_25 : i32
    scf.if %33 {
      %c3_30 = arith.constant 3 : index
      %c0_31 = arith.constant 0 : index
      %40 = vector.load %arg5[%c3_30, %c0_31] : memref<4x128xf32, #tpu.memory_space<vmem>>, vector<1x128xf32>
      %41 = vector.broadcast %40 : vector<1x128xf32> to vector<8x128xf32>
      %42 = arith.addf %30, %41 : vector<8x128xf32>
      %c3_32 = arith.constant 3 : index
      %c0_33 = arith.constant 0 : index
      %c0_34 = arith.constant 0 : index
      %43 = vector.load %arg7[%c3_32, %c0_33, %c0_34] : memref<4x8x128xf32, #tpu.memory_space<vmem>>, vector<1x8x128xf32>
      %44 = vector.shape_cast %43 : vector<1x8x128xf32> to vector<8x128xf32>
      %45 = vector.shape_cast %42 : vector<8x128xf32> to vector<1x8x128xf32>
      tpu.vector_store %arg7[%c3_32, %c0_33, %c0_34], %45 {strides = array<i32>} : memref<4x8x128xf32, #tpu.memory_space<vmem>>, vector<1x8x128xf32>,
    } else {
    }
    %c0_i32_26 = arith.constant 0 : i32
    %34 = arith.cmpi sgt, %arg2, %c0_i32_26 : i32
    %35 = arith.extui %34 : i1 to i32
    %c0_i32_27 = arith.constant 0 : i32
    %36 = arith.cmpi ne, %35, %c0_i32_27 : i32
    scf.if %36 {
      %c3_30 = arith.constant 3 : index
      %c0_31 = arith.constant 0 : index
      %c0_32 = arith.constant 0 : index
      %40 = vector.load %arg7[%c3_30, %c0_31, %c0_32] : memref<4x8x128xf32, #tpu.memory_space<vmem>>, vector<1x8x128xf32>
      %41 = vector.shape_cast %40 : vector<1x8x128xf32> to vector<8x128xf32>
      %42 = arith.addf %41, %30 : vector<8x128xf32>
      %c3_33 = arith.constant 3 : index
      %c0_34 = arith.constant 0 : index
      %c0_35 = arith.constant 0 : index
      %43 = vector.load %arg7[%c3_33, %c0_34, %c0_35] : memref<4x8x128xf32, #tpu.memory_space<vmem>>, vector<1x8x128xf32>
      %44 = vector.shape_cast %43 : vector<1x8x128xf32> to vector<8x128xf32>
      %45 = vector.shape_cast %42 : vector<8x128xf32> to vector<1x8x128xf32>
      tpu.vector_store %arg7[%c3_33, %c0_34, %c0_35], %45 {strides = array<i32>} : memref<4x8x128xf32, #tpu.memory_space<vmem>>, vector<1x8x128xf32>,
    } else {
    }
    %c0_i32_28 = arith.constant 0 : i32
    %37 = arith.cmpi eq, %arg2, %c0_i32_28 : i32
    %38 = arith.extui %37 : i1 to i32
    %c0_i32_29 = arith.constant 0 : i32
    %39 = arith.cmpi ne, %38, %c0_i32_29 : i32
    scf.if %39 {
      %c0_30 = arith.constant 0 : index
      %c0_31 = arith.constant 0 : index
      %c0_32 = arith.constant 0 : index
      %40 = vector.load %arg7[%c0_30, %c0_31, %c0_32] : memref<4x8x128xf32, #tpu.memory_space<vmem>>, vector<1x8x128xf32>
      %41 = vector.shape_cast %40 : vector<1x8x128xf32> to vector<8x128xf32>
      %c1_33 = arith.constant 1 : index
      %c0_34 = arith.constant 0 : index
      %c0_35 = arith.constant 0 : index
      %42 = vector.load %arg7[%c1_33, %c0_34, %c0_35] : memref<4x8x128xf32, #tpu.memory_space<vmem>>, vector<1x8x128xf32>
      %43 = vector.shape_cast %42 : vector<1x8x128xf32> to vector<8x128xf32>
      %44 = arith.maximumf %41, %43 : vector<8x128xf32>
      %c2_36 = arith.constant 2 : index
      %c0_37 = arith.constant 0 : index
      %c0_38 = arith.constant 0 : index
      %45 = vector.load %arg7[%c2_36, %c0_37, %c0_38] : memref<4x8x128xf32, #tpu.memory_space<vmem>>, vector<1x8x128xf32>
      %46 = vector.shape_cast %45 : vector<1x8x128xf32> to vector<8x128xf32>
      %47 = arith.maximumf %44, %46 : vector<8x128xf32>
      %c3_39 = arith.constant 3 : index
      %c0_40 = arith.constant 0 : index
      %c0_41 = arith.constant 0 : index
      %48 = vector.load %arg7[%c3_39, %c0_40, %c0_41] : memref<4x8x128xf32, #tpu.memory_space<vmem>>, vector<1x8x128xf32>
      %49 = vector.shape_cast %48 : vector<1x8x128xf32> to vector<8x128xf32>
      %50 = arith.maximumf %47, %49 : vector<8x128xf32>
      %c0_42 = arith.constant 0 : index
      %c0_43 = arith.constant 0 : index
      %51 = vector.load %arg6[%c0_42, %c0_43] : memref<8x128xf32, #tpu.memory_space<vmem>>, vector<8x128xf32>
      tpu.vector_store %arg6[%c0_42, %c0_43], %50 {strides = array<i32>} : memref<8x128xf32, #tpu.memory_space<vmem>>, vector<8x128xf32>,
    } else {
    }
    return
  }
  func.func @transform_0(%arg0: i32, %arg1: i32, %arg2: i32) -> (i32, i32) {
    %c0_i32 = arith.constant 0 : i32
    return %arg0, %arg2 : i32, i32
  }
  func.func @transform_1(%arg0: i32, %arg1: i32, %arg2: i32) -> (i32, i32, i32) {
    %c0_i32 = arith.constant 0 : i32
    %c0_i32_0 = arith.constant 0 : i32
    return %c0_i32, %arg2, %arg1 : i32, i32, i32
  }
  func.func @transform_2(%arg0: i32, %arg1: i32, %arg2: i32) -> (i32, i32) {
    %c0_i32 = arith.constant 0 : i32
    %c0_i32_0 = arith.constant 0 : i32
    return %c0_i32, %arg1 : i32, i32
  }
  func.func @transform_3(%arg0: i32, %arg1: i32, %arg2: i32) -> (i32, i32) {
    %c0_i32 = arith.constant 0 : i32
    return %arg0, %arg1 : i32, i32
  }
}

</mosaic_0001>

<bundles_post_ra>
// kernel: maxout_pallas.1
= control target key start
LH: loop header
LB: loop body
LE: loop exit
PB: predicated region body
PF: predicated region fallthrough
CT: control target
= control target key end

     0   :  { %8 = vsyncpa [#allocation4], 0  ;;  %s1202_s0 = inlined_call_operand.hbm [shape: f32[16,32], index: 0, kind: input, shape index: {}]   ;;  %s1203_s1 = inlined_call_operand.hbm [shape: f32[4,32,128], index: 1, kind: input, shape index: {}]   ;;  %s1204_s2 = inlined_call_operand.vmem [shape: f32[4,128], index: 2, kind: input, shape index: {}]   ;;  %s1205_s3 = inlined_call_operand.vmem [shape: f32[16,128], index: 3, kind: output, shape index: {}]  }
   0x1   :  { %10 = vsyncpa [#allocation4 + $0x1], 0 }
   0x2   :  { %11 = vsyncpa [#allocation6], 0  ;;  %s1058_s12 = smov 0   ;;  %s1060_s13 = smov 0  }
   0x3   :  { %s1062_s14 = smov 0   ;;  %s1064_s15 = smov 0  }
   0x4   :  { %s1066_s16 = smov 0   ;;  %s1068_s17 = smov 0  }
   0x5 LB: > { %s766_s18 = sadd.s32 4294967295, %s1030_s17   ;;  %p58_p0 = scmp.ne.s32.totalorder %s1014_s13, %s1010_s12  ;;  %s1030_s17 = sphi %s1068_s17, %s17_s17   ;;  %s1026_s16 = sphi %s1066_s16, %s1215_s16   ;;  %s1022_s15 = sphi %s1064_s15, %s1214_s15   ;;  %s1018_s14 = sphi %s1062_s14, %s1213_s14   ;;  %s1014_s13 = sphi %s1060_s13, %s1212_s13   ;;  %s1010_s12 = sphi %s1058_s12, %s1211_s12  }
   0x6   : > { %p1088_p1 = scmp.eq.s32.totalorder %s766_s18, 0  ;;  %p768_p2 = scmp.ge.s32.totalorder %s1030_s17, 1 }
   0x7   : > { %p151_p3 = scmp.lt.s32.totalorder %s1030_s17, 3  ;;  %s1032_s22 = smov [#allocation5]  }
   0x8   : > { %p1096_p4 = por %p1088_p1, %p58_p0  ;;  %s167_s23 = sshll.u32 %s1032_s22, 4  ;;  %s168_s23 = int_to_ptr.vmem [resolvable:$true] %s167_s23 }
   0x9   : > { %p1100_p5 = pnand %p768_p2, %p151_p3  ;;  %s36_s25 = sadd.s32 1, %s1026_s16 }
   0xa   : > { %s933_s26 = scalar_lea.vmem %s168_s23, 2048  ;;  %p941_p12 = scmp.lt.s32.totalorder %s168_s23, %s168_s23 }
   0xb   : > { %p858_p6 = pneg %p1100_p5  ;;  %p934_p9 = scmp.ne.s32.totalorder %s168_s23, %s933_s26 }
   0xc   : > { %p942_p13 = scmp.lt.s32.totalorder %s933_s26, %s933_s26 }
   0xd   : > { %p1108_p7 = pnand %p858_p6, %p1088_p1 }
   0xe   : > { %p943_p0 = por %p942_p13, %p941_p12 }
   0xf   : > { %p924_p8 = pneg %p1108_p7 }
  0x11   : > { %p936_p10 = pnand %p934_p9, %p924_p8 }
  0x13   : > { %p937_p11 = pneg %p936_p10 }
  0x15   : > { %p944_p2 = pnand %p943_p0, %p937_p11 }
  0x17   : > { %947 = shalt.err (!%p944_p2)
}
  0x18   : > { %s1033_s27 = smov 128   ;;  %s1034_s28 = smov 8  }
  0x19   : > { %861 = dma.hbm_to_vmem [thread:$0]  (!%p1108_p7), %s1203_s1, 2048, %s168_s23, [#allocation6], %s1033_s27, %s1033_s27, %s1034_s28  }
  0x1a   : > { %p38_p3 = scmp.ge.s32.totalorder %s36_s25, 2  ;;  %s45_s4 = sadd.s32 1, %s1018_s14 }
  0x1b   : > { %p52_p6 = scmp.ne.s32.totalorder %s1018_s14, %s1014_s13  ;;  %p53_p8 = scmp.eq.s32.totalorder %s1030_s17, 0 }
  0x1c   : > { %s1217_s25 = smov (%p38_p3, %s36_s25), 0  ;;  %p867_p10 = scmp.lt.s32.totalorder %s1030_s17, 2 }
  0x1d   : > { %p54_p9 = por %p53_p8, %p52_p6  ;;  %s40_s5 = ssub.s32 %s1026_s16, %s1217_s25 }
  0x1e   : > { %s188_s6 = sand.u32 1, %s1018_s14   ;;  %p43_p11 = scmp.eq.s32.totalorder %s40_s5, 0 }
  0x1f   : > { %s772_s7 = sshll.u32 %s188_s6, 3  ;;  %s773_s8 = sshll.u32 %s1026_s16, 7 }
  0x20   : > { %s1132_s9 = scalar_select %p43_p11, %s1018_s14, %s45_s4  }
  0x21   : > { %s198_s12 = scalar_lea.hbm %s1202_s0, %s773_s8  ;;  %s192_s18 = scalar_lea.vmem [#allocation3], %s772_s7 }
  0x22   : > { %s200_s22 = sshll.u32 %s192_s18, 4  ;;  %p1137_p7 = pnand %p867_p10, %p54_p9  ;;  %s201_s22 = int_to_ptr.vmem [resolvable:$true] %s200_s22 }
  0x23   : > { %s189_s24 = scalar_lea.sflag [#allocation4], %s188_s6  ;;  %s961_s26 = scalar_lea.vmem %s201_s22, 128 }
  0x24   : > { %p950_p12 = pneg %p1137_p7  ;;  %p962_p13 = scmp.ne.s32.totalorder %s201_s22, %s961_s26 }
  0x25   : > { %s1035_s27 = smov [#allocation3]  }
  0x26   : > { %p964_p0 = pnand %p962_p13, %p950_p12  ;;  %s966_s28 = sshll.u32 %s1035_s27, 4  ;;  %s967_s28 = int_to_ptr.vmem [resolvable:$false] %s966_s28 }
  0x27   : > { %s968_s29 = scalar_lea.vmem %s967_s28, 256  ;;  %p969_p3 = scmp.lt.s32.totalorder %s201_s22, %s967_s28 }
  0x28   : > { %p965_p2 = pneg %p964_p0  ;;  %p970_p6 = scmp.lt.s32.totalorder %s968_s29, %s961_s26 }
  0x2a   : > { %p971_p8 = por %p970_p6, %p969_p3 }
  0x2c   : > { %p972_p9 = pnand %p971_p8, %p965_p2 }
  0x2e   : > { %975 = shalt.err (!%p972_p9)
}
  0x2f   : > { %865 = dma.hbm_to_vmem [thread:$0]  (!%p1137_p7), %s198_s12, 128, %s201_s22, %s189_s24  }
  0x30   : > { %209 = sbr.rel (%p1100_p5) target bundleno = 276 (0x114), region = 32  ;;  %s211_s30 = sand.u32 (!%p1100_p5), 1, %s1014_s13  }
  0x31   : > { %s1148_s4 = sshll.u32 (!%p1100_p5), %s211_s30, 3  ;;  %s212_s5 = scalar_lea.sflag (!%p1100_p5), [#allocation4], %s211_s30 }
  0x32   : > { %s215_s6 = scalar_lea.vmem (!%p1100_p5), [#allocation3], %s1148_s4 }
  0x35   : > { %1001 = dma.done.wait (%p1096_p4), %s212_s5, 128  }
  0x36   : > { %1003 = vsyncadd (%p1096_p4), %s212_s5, 4294967168 }
  0x37   : > { %1005 = dma.done.wait (%p1088_p1), [#allocation6], 2048  }
  0x38   : > { %1007 = vsyncadd (%p1088_p1), [#allocation6], 4294965248  ;;  %v1036_v0 = vmov 0.0   ;;  %vm1037_vm0 = vmmov 0   ;;  %v264_v1 = vld [vmem:[#allocation5 + $0x18] sm:$0xff]  ;;  %v263_v3 = vld [vmem:[#allocation5 + $0x10] sm:$0xff] }
  0x39   : > { %808 = vmatprep.subr.mxu0 %v1036_v0  ;;  %819 = vmatprep.subr.mxu1 %v1036_v0  ;;  %v361_v2 = vld [vmem:[#allocation5 + $0x38] sm:$0xff]  ;;  %v360_v4 = vld [vmem:[#allocation5 + $0x30] sm:$0xff]  ;;  %v262_v5 = vld [vmem:[#allocation5 + $0x8] sm:$0xff]  ;;  %vm265_vm1 = vcmask 261120   ;;  %p253_p1 = scmp.lt.s32.totalorder %s1022_s15, 1 }
  0x3a   : > { %816 = vmatprep.mubr.msk.f32.mxu0 %vm1037_vm0, %v1036_v0  ;;  %827 = vmatprep.mubr.msk.f32.mxu1 %vm1037_vm0, %v1036_v0  ;;  %v359_v6 = vld [vmem:[#allocation5 + $0x28] sm:$0xff]  ;;  %v261_v7 = vld [vmem:[#allocation5] sm:$0xff]  ;;  %v260_v9 = vld [vmem:[%s215_s6] sm:$0xff] }
  0x3b   : > { %809 = vmatpush3.msra.mxu0 %v264_v1  ;;  %820 = vmatpush3.msra.mxu1 %v361_v2  ;;  %v358_v8 = vld [vmem:[#allocation5 + $0x20] sm:$0xff]  ;;  %v454_v10 = vld [vmem:[#allocation5 + $0x58] sm:$0xff]  ;;  %v453_v12 = vld [vmem:[#allocation5 + $0x50] sm:$0xff]  ;;  %s1219_s15 = smov (!%p253_p1, %s1022_s15), 1 }
  0x3c   : > { %810 = vmatprep.subr.mxu0 %v1036_v0  ;;  %821 = vmatprep.subr.mxu1 %v1036_v0  ;;  %v547_v11 = vld [vmem:[#allocation5 + $0x78] sm:$0xff]  ;;  %v546_v13 = vld [vmem:[#allocation5 + $0x70] sm:$0xff]  ;;  %v452_v14 = vld [vmem:[#allocation5 + $0x48] sm:$0xff]  ;;  %s777_s18 = sshll.u32 %s1219_s15, 3 }
  0x3d   : > { %811 = vmatpush3.msra.mxu0 %v263_v3  ;;  %822 = vmatpush3.msra.mxu1 %v360_v4  ;;  %v545_v15 = vld [vmem:[#allocation5 + $0x68] sm:$0xff]  ;;  %v451_v16 = vld [vmem:[#allocation5 + $0x40] sm:$0xff]  ;;  %v779_v22 = vld [vmem:[%s1204_s2] ss:$0 sm:$0xff]  ;;  %s259_s24 = scalar_lea.vmem %s1205_s3, %s777_s18 }
  0x3e   : > { %812 = vmatprep.subr.mxu0 %v1036_v0  ;;  %823 = vmatprep.subr.mxu1 %v1036_v0  ;;  %v544_v17 = vld [vmem:[#allocation5 + $0x60] sm:$0xff]  ;;  %v781_v23 = vld [vmem:[%s1204_s2 + $0x1] ss:$0 sm:$0xff]  ;;  %v783_v26 = vld [vmem:[%s1204_s2 + $0x2] ss:$0 sm:$0xff] }
  0x3f   : > { %813 = vmatpush3.msra.mxu0 %v262_v5  ;;  %824 = vmatpush3.msra.mxu1 %v359_v6  ;;  %v785_v27 = vld [vmem:[%s1204_s2 + $0x3] ss:$0 sm:$0xff] }
  0x40   : > { %814 = vmatprep.subr.mxu0 %v1036_v0  ;;  %825 = vmatprep.subr.mxu1 %v1036_v0 }
  0x41   : > { %815 = vmatpush3.msra.mxu0 %v261_v7  ;;  %826 = vmatpush3.msra.mxu1 %v358_v8 }
  0x42   : > { %817 = vmatmul.mubr.msk.f32.vlgmr.msra.gmra.mxu0 %vm265_vm1, %v260_v9  ;;  %830 = vmatprep.subr.mxu0 %v1036_v0 }
  0x43   : > { %841 = vmatprep.subr.mxu1 %v1036_v0  ;;  %828 = vmatmul.mubr.msk.f32.vlgmr.msra.gmra.mxu1 %vm265_vm1, %v260_v9 }
  0x44   : > { %831 = vmatpush3.msra.mxu0 %v454_v10  ;;  %842 = vmatpush3.msra.mxu1 %v547_v11 }
  0x45   : > { %832 = vmatprep.subr.mxu0 %v1036_v0  ;;  %843 = vmatprep.subr.mxu1 %v1036_v0 }
  0x46   : > { %833 = vmatpush3.msra.mxu0 %v453_v12  ;;  %844 = vmatpush3.msra.mxu1 %v546_v13 }
  0x47   : > { %834 = vmatprep.subr.mxu0 %v1036_v0  ;;  %845 = vmatprep.subr.mxu1 %v1036_v0 }
  0x48   : > { %835 = vmatpush3.msra.mxu0 %v452_v14  ;;  %846 = vmatpush3.msra.mxu1 %v545_v15 }
  0x49   : > { %836 = vmatprep.subr.mxu0 %v1036_v0  ;;  %847 = vmatprep.subr.mxu1 %v1036_v0 }
  0x4a   : > { %837 = vmatpush3.msra.mxu0 %v451_v16  ;;  %838 = vmatprep.mubr.msk.f32.mxu0 %vm1037_vm0, %v1036_v0 }
  0x4b   : > { %848 = vmatpush3.msra.mxu1 %v544_v17  ;;  %849 = vmatprep.mubr.msk.f32.mxu1 %vm1037_vm0, %v1036_v0 }
  0x4c   : > { %839 = vmatmul.mubr.msk.f32.vlgmr.msra.gmra.mxu0 %vm265_vm1, %v260_v9  ;;  %850 = vmatmul.mubr.msk.f32.vlgmr.msra.gmra.mxu1 %vm265_vm1, %v260_v9 }
 0x102   : > { %v335_v18 = vpop.f32.mrf.mxu0 }
 0x103   : > { %v428_v19 = vpop.f32.mrf.mxu1  ;;  %v348_v24 = vadd.f32 %v779_v22, %v335_v18 }
 0x104   : > { %v818_v20 = vpop.f32.mrf.mxu0  ;;  %v440_v25 = vadd.f32 %v781_v23, %v428_v19 }
 0x105   : > { %v829_v21 = vpop.f32.mrf.mxu1 }
 0x106   : > { %v642_v30 = vmax.f32 %v348_v24, %v440_v25 }
 0x10c   : > { %v521_v28 = vpop.f32.mrf.mxu0  ;;  %v614_v29 = vpop.f32.mrf.mxu1 }
 0x10d   : > { %v533_v31 = vadd.f32 %v783_v26, %v521_v28  ;;  %v626_v32 = vadd.f32 %v785_v27, %v614_v29 }
 0x10e   : > { %v840_v33 = vpop.f32.mrf.mxu0  ;;  %v851_v34 = vpop.f32.mrf.mxu1 }
 0x10f   : > { %v645_v35 = vmax.f32 %v642_v30, %v533_v31 }
 0x111   : > { %v648_v36 = vmax.f32 %v645_v35, %v626_v32 }
 0x113   : > { %649 = vst [vmem:[%s259_s24] sm:$0xff] %v648_v36 }
 0x114 PF: > { %s17_s17 = sadd.s32 1, %s1030_s17   ;;  %s1211_s12 = smov %s1014_s13 }
 0x115   : > { %p14_p4 = scmp.ge.s32.totalorder %s17_s17, 4   ;;  %s1212_s13 = smov %s1018_s14 }
 0x116   : > { %s1213_s14 = smov %s1132_s9  ;;  %s1214_s15 = smov %s1026_s16 }
 0x117   : > { %s1215_s16 = smov %s1217_s25  ;;  %16 = sbr.rel (!%p14_p4) target bundleno = 5 (0x5), region = 128 }
 0x11c   :  { %675 = vsyncpa [#allocation4], 1 }
 0x11d   :  { %677 = vsyncpa [#allocation4 + $0x1], 1 }
 0x11e   :  { %678 = vsyncpa [#allocation6], 1 }

</bundles_post_ra>
